<compile_context>
chip_gen: v7x
topology: tpu7x:2x2x1
jax: 0.10.0
libtpu: 0.0.40
codegen_flags: <defaults>
</compile_context>

<pallas_src>
import functools

import numpy as np

import jax
import jax.numpy as jnp
from jax import lax
from jax.experimental import pallas as pl
from jax.experimental.pallas import tpu as pltpu

LANES = 128


def _round_up(x, m):
    return (x + m - 1) // m * m


# ----------------------------- Pallas kernel --------------------------------
def _in_layer_kernel(eps, feat_ref, spread_ref, wc_ref, gmean_ref, pos_ref,
                     vmask_ref, gamma_ref, beta_ref, out_ref):
    """One packed-row tile (Tg packed rows = Tg * P original rows).

    feat_ref   : (Tg, P*sw)   f32  streamed raw features (cat idx | num | 1)
    spread_ref : (P*sw, P*Kp) f32  resident 0/1 spread/broadcast matrix
    wc_ref     : (P*Kp, 128)  f32  resident block-diag, E-centered weights
    gmean_ref  : (128, 128)   f32  resident block-diag (1/E) group-mean matrix
    pos_ref    : (1, P*Kp)    f32  within-group position (vocab lanes only)
    vmask_ref  : (1, P*Kp)    f32  1.0 on vocab lanes, 0.0 elsewhere
    gamma_ref  : (1, 128)     f32  LayerNorm gamma, tiled P times
    beta_ref   : (1, 128)     f32  LayerNorm beta,  tiled P times
    out_ref    : (Tg, 128)    f32  lane-dense output (P rows per 128 lanes)
    """
    # Broadcast each row's cat index across its column's vocab range and drop
    # the numericals / constant 1 into their slots (exact: one 0/1 term each).
    y = jnp.dot(feat_ref[...], spread_ref[...],
                preferred_element_type=jnp.float32)            # (Tg, P*Kp)

    # Multi-hot on the vocab lanes, raw values (num, 1) elsewhere.
    onehot = (y == pos_ref[...]).astype(jnp.float32)
    xp = jnp.where(vmask_ref[...] > 0.5, onehot, y)            # (Tg, P*Kp)

    # One MXU matmul = embedding sum + numeric projection + bias, with the
    # LayerNorm mean removal already folded into the (E-centered) weights.
    centered = jnp.dot(xp, wc_ref[...],
                       preferred_element_type=jnp.float32)     # (Tg, 128)

    # Per-original-row variance (mean over its 32-lane group), broadcast back
    # across the group by the block-diagonal 1/E matrix.
    var_b = jnp.dot(centered * centered, gmean_ref[...],
                    preferred_element_type=jnp.float32)        # (Tg, 128)

    out_ref[...] = (centered * lax.rsqrt(var_b + eps)
                    * gamma_ref[...] + beta_ref[...])


# ------------------------------ wrapper --------------------------------------
def in_layer_forward(cat_x, num_x, emb_tables, lin_w_t, lin_b, ln_g, ln_b,
                     eps=1e-5, max_tile_packed=2048):
    """cat_x: (B, S, C) int32, num_x: (B, S, F) f32 -> (B, S, E) f32."""
    B, S, C = cat_x.shape
    F = num_x.shape[-1]
    E = int(emb_tables[0].shape[1])
    N = B * S

    assert LANES % E == 0, "lane-dense packing requires embedding_size | 128"
    P = LANES // E                         # original rows packed per lane row

    vocab_sizes = [int(t.shape[0]) for t in emb_tables]
    Vtot = int(sum(vocab_sizes))
    offs = np.concatenate([[0], np.cumsum(vocab_sizes)[:-1]]).astype(np.int64)
    Kp = Vtot + F + 1                      # multi-hot | numericals | constant 1
    assert Kp <= E, "one-hot-matmul path assumes Vtot + F + 1 <= embedding_size"

    sw = C + F + 1                         # raw slots streamed per original row
    sw_p = sw
    while (P * sw_p) % 8:                  # keep packed lane count 8-aligned
        sw_p += 1

    # -------- host-side constants (VMEM-resident across grid steps) ---------
    table_cat = jnp.concatenate(emb_tables, axis=0).astype(jnp.float32)
    w_full = jnp.concatenate(
        [table_cat, lin_w_t.astype(jnp.float32),
         lin_b.reshape(1, E).astype(jnp.float32)], axis=0)           # (Kp, E)
    # x @ (W - rowmean_E(W)) == (x @ W) - mean_E(x @ W): fold LN mean removal.
    w_centered = w_full - jnp.mean(w_full, axis=1, keepdims=True)
    eye_p = jnp.eye(P, dtype=jnp.float32)
    wc_blk = jnp.kron(eye_p, w_centered)                             # (P*Kp, 128)
    gmean = jnp.kron(eye_p, jnp.full((E, E), 1.0 / E, jnp.float32))  # (128, 128)

    spread = np.zeros((P * sw_p, P * Kp), np.float32)
    posmap = np.zeros((1, P * Kp), np.float32)
    vmask = np.zeros((1, P * Kp), np.float32)
    for j in range(P):
        for c in range(C):
            lo = int(offs[c])
            hi = lo + vocab_sizes[c]
            spread[j * sw_p + c, j * Kp + lo: j * Kp + hi] = 1.0
        for f in range(F):
            spread[j * sw_p + C + f, j * Kp + Vtot + f] = 1.0
        spread[j * sw_p + C + F, j * Kp + Vtot + F] = 1.0
        posmap[0, j * Kp: j * Kp + Vtot] = np.arange(Vtot, dtype=np.float32)
        vmask[0, j * Kp: j * Kp + Vtot] = 1.0
    spread = jnp.asarray(spread)
    posmap = jnp.asarray(posmap)
    vmask = jnp.asarray(vmask)
    gamma_pk = jnp.tile(ln_g.astype(jnp.float32), P).reshape(1, LANES)
    beta_pk = jnp.tile(ln_b.astype(jnp.float32), P).reshape(1, LANES)

    # -------- pack streamed features into one dense (Ng, P*sw_p) slab -------
    cat_f = (cat_x.reshape(N, C).astype(jnp.int32)
             + jnp.asarray(offs, jnp.int32)[None, :]).astype(jnp.float32)
    num_f = num_x.reshape(N, F).astype(jnp.float32)
    raw = jnp.concatenate([cat_f, num_f, jnp.ones((N, 1), jnp.float32)],
                          axis=1)                                    # (N, sw)
    if sw_p != sw:
        raw = jnp.pad(raw, ((0, 0), (0, sw_p - sw)))

    # -------- VMEM budget (lane-padding aware) & packed-row tiling ----------
    try:
        vmem_cap = int(pltpu.get_tpu_info().vmem_capacity_bytes)
    except Exception:                      # be conservative if the query fails
        vmem_cap = 64 * 1024 * 1024        # v7x physical VMEM
    vmem_limit = max(16 * 1024 * 1024,
                     min(48 * 1024 * 1024, int(vmem_cap * 0.6)))
    # Resident params (x2 buffers), everything lane-padded to 128.
    resident_b = 2 * 4 * LANES * (_round_up(P * sw_p, 8)   # spread
                                  + _round_up(P * Kp, 8)   # wc_blk
                                  + LANES                  # gmean
                                  + 4 * 8)                 # posmap/vmask/g/b
    # Per packed row: feat + out double-buffers plus ~8 lane-padded f32 temps.
    bytes_per_packed_row = 4 * LANES * (2 + 2 + 8)
    tile_cap = max(8, ((int(vmem_limit * 0.7) - resident_b)
                       // bytes_per_packed_row) // 8 * 8)
    max_tile_packed = min(max_tile_packed, tile_cap)

    Ng = -(-N // P)                        # packed rows actually needed
    G = max(1, -(-Ng // max_tile_packed))
    if G == 1 and Ng >= 16:
        G = 2                              # keep both v7x TensorCores busy
    tile_g = _round_up(-(-Ng // G), 8)     # ragged tail <= 8 packed rows/step
    Ng_pad = G * tile_g
    n_rows_pad = Ng_pad * P
    if n_rows_pad != N:
        raw = jnp.pad(raw, ((0, n_rows_pad - N), (0, 0)))
    feat = raw.reshape(Ng_pad, P * sw_p)

    out = pl.pallas_call(
        functools.partial(_in_layer_kernel, eps),
        out_shape=jax.ShapeDtypeStruct((Ng_pad, LANES), jnp.float32),
        grid=(G,),
        in_specs=[
            pl.BlockSpec((tile_g, P * sw_p), lambda i: (i, 0)),   # streamed
            pl.BlockSpec((P * sw_p, P * Kp), lambda i: (0, 0)),   # resident
            pl.BlockSpec((P * Kp, LANES), lambda i: (0, 0)),      # resident
            pl.BlockSpec((LANES, LANES), lambda i: (0, 0)),       # resident
            pl.BlockSpec((1, P * Kp), lambda i: (0, 0)),          # resident
            pl.BlockSpec((1, P * Kp), lambda i: (0, 0)),          # resident
            pl.BlockSpec((1, LANES), lambda i: (0, 0)),           # resident
            pl.BlockSpec((1, LANES), lambda i: (0, 0)),           # resident
        ],
        out_specs=pl.BlockSpec((tile_g, LANES), lambda i: (i, 0)),
        compiler_params=pltpu.CompilerParams(
            dimension_semantics=("parallel",),
            vmem_limit_bytes=int(vmem_limit)),
    )(feat, spread, wc_blk, gmean, posmap, vmask, gamma_pk, beta_pk)

    # (Ng_pad, 128) row-major is exactly (Ng_pad*P, E): the reshape is free.
    return out.reshape(Ng_pad * P, E)[:N].reshape(B, S, E)


# ------------------------ deterministic parameter init -----------------------
def xavier_uniform(key, shape, fan_in, fan_out, dtype=jnp.float32):
    bound = (6.0 / (fan_in + fan_out)) ** 0.5
    return jax.random.uniform(key, shape, dtype, minval=-bound, maxval=bound)


# --------------------------- pure-JAX reference -------------------------------
def in_layer_reference(cat_x, num_x, emb_tables, lin_w_t, lin_b, ln_g, ln_b,
                       eps=1e-5):
    embs = [tab[cat_x[..., i]] for i, tab in enumerate(emb_tables)]
    x = sum(embs)
    x = x + (num_x @ lin_w_t + lin_b)
    mean = jnp.mean(x, axis=-1, keepdims=True)
    var = jnp.mean((x - mean) ** 2, axis=-1, keepdims=True)
    return (x - mean) * lax.rsqrt(var + eps) * ln_g + ln_b


if __name__ == "__main__":
    # Module config (strategy='sum' so LayerNorm(embedding_size) is consistent)
    categorical_cols = ["cat_a", "cat_b"]
    categorical_sizes = {"cat_a": 11, "cat_b": 7}
    numerical_cols = ["n0", "n1", "n2"]
    embedding_size = 32           # strategy 'sum' -> in_embedding_size == 32

    key = jax.random.PRNGKey(0)
    keys = jax.random.split(key, 10)

    # Embedding tables (xavier_uniform, matching init_params; the PyTorch
    # module re-initializes the whole table so the padding_idx row is NOT zero).
    E = embedding_size
    emb_tables = []
    for i, col in enumerate(categorical_cols):
        V = categorical_sizes[col]
        emb_tables.append(xavier_uniform(keys[i], (V, E), V, E))

    # Linear(len(numerical_cols) -> E): xavier weight, default-uniform bias.
    F = len(numerical_cols)
    lin_w = xavier_uniform(keys[2], (E, F), F, E)          # torch shape (out, in)
    lin_w_t = lin_w.T                                      # (F, E) for the kernel
    b_bound = 1.0 / (F ** 0.5)
    lin_b = jax.random.uniform(keys[3], (E,), jnp.float32,
                               minval=-b_bound, maxval=b_bound)

    # LayerNorm params (default: gamma=1, beta=0, eps=1e-5).
    ln_g = jnp.ones((E,), jnp.float32)
    ln_b = jnp.zeros((E,), jnp.float32)

    # ---- case 1: small shapes (B=2, S=8), single grid step ----
    B, S = 2, 8
    cat_x = jnp.stack(
        [jax.random.randint(keys[4], (B, S), 0, categorical_sizes["cat_a"]),
         jax.random.randint(keys[5], (B, S), 0, categorical_sizes["cat_b"])],
        axis=-1).astype(jnp.int32)                         # (B, S, 2)
    num_x = jax.random.normal(keys[6], (B, S, F), jnp.float32)

    out = in_layer_forward(cat_x, num_x, emb_tables, lin_w_t, lin_b, ln_g, ln_b)
    out = jax.block_until_ready(out)
    ref = in_layer_reference(cat_x, num_x, emb_tables, lin_w_t, lin_b, ln_g, ln_b)
    assert out.shape == (B, S, E)
    assert jnp.allclose(out, ref, atol=1e-4, rtol=1e-4), "mismatch vs reference"

    # ---- case 2: ragged N (exercises >=2 grid steps and tail padding) ----
    B2, S2 = 3, 37
    cat_x2 = jnp.stack(
        [jax.random.randint(keys[7], (B2, S2), 0, categorical_sizes["cat_a"]),
         jax.random.randint(keys[8], (B2, S2), 0, categorical_sizes["cat_b"])],
        axis=-1).astype(jnp.int32)
    num_x2 = jax.random.normal(keys[9], (B2, S2, F), jnp.float32)

    out2 = in_layer_forward(cat_x2, num_x2, emb_tables, lin_w_t, lin_b,
                            ln_g, ln_b)
    out2 = jax.block_until_ready(out2)
    ref2 = in_layer_reference(cat_x2, num_x2, emb_tables, lin_w_t, lin_b,
                              ln_g, ln_b)
    assert out2.shape == (B2, S2, E)
    assert jnp.allclose(out2, ref2, atol=1e-4, rtol=1e-4), "mismatch (case 2)"

    print("KERNEL_OK")
</pallas_src>

<mosaic_0001>
module attributes {stable_mosaic.version = 11 : i64} {
  func.func @_in_layer_kernel(%arg0: i32, %arg1: memref<8x24xf32, #tpu.memory_space<vmem>>, %arg2: memref<24x88xf32, #tpu.memory_space<vmem>>, %arg3: memref<88x128xf32, #tpu.memory_space<vmem>>, %arg4: memref<128x128xf32, #tpu.memory_space<vmem>>, %arg5: memref<1x88xf32, #tpu.memory_space<vmem>>, %arg6: memref<1x88xf32, #tpu.memory_space<vmem>>, %arg7: memref<1x128xf32, #tpu.memory_space<vmem>>, %arg8: memref<1x128xf32, #tpu.memory_space<vmem>>, %arg9: memref<8x128xf32, #tpu.memory_space<vmem>>) attributes {dimension_semantics = [#tpu.dimension_semantics<parallel>], iteration_bounds = array<i64: 1>, scalar_prefetch = 0 : i64, scratch_operands = 0 : i64, tpu.core_type = #tpu.core_type<tc>, window_params = [{transform_indices = @transform_0, window_bounds = array<i64: 8, 24>}, {pipeline_mode = #tpu.pipeline_mode<synchronous>, transform_indices = @transform_1, window_bounds = array<i64: 24, 88>}, {pipeline_mode = #tpu.pipeline_mode<synchronous>, transform_indices = @transform_2, window_bounds = array<i64: 88, 128>}, {pipeline_mode = #tpu.pipeline_mode<synchronous>, transform_indices = @transform_3, window_bounds = array<i64: 128, 128>}, {pipeline_mode = #tpu.pipeline_mode<synchronous>, transform_indices = @transform_4, window_bounds = array<i64: 1, 88>}, {pipeline_mode = #tpu.pipeline_mode<synchronous>, transform_indices = @transform_5, window_bounds = array<i64: 1, 88>}, {pipeline_mode = #tpu.pipeline_mode<synchronous>, transform_indices = @transform_6, window_bounds = array<i64: 1, 128>}, {pipeline_mode = #tpu.pipeline_mode<synchronous>, transform_indices = @transform_7, window_bounds = array<i64: 1, 128>}, {transform_indices = @transform_8, window_bounds = array<i64: 8, 128>}]} {
    %c0 = arith.constant 0 : index
    %c0_0 = arith.constant 0 : index
    %0 = vector.load %arg1[%c0, %c0_0] : memref<8x24xf32, #tpu.memory_space<vmem>>, vector<8x24xf32>
    %c0_1 = arith.constant 0 : index
    %c0_2 = arith.constant 0 : index
    %1 = vector.load %arg2[%c0_1, %c0_2] : memref<24x88xf32, #tpu.memory_space<vmem>>, vector<24x88xf32>
    %cst = arith.constant dense<0.000000e+00> : vector<8x88xf32>
    %2 = tpu.matmul %0, %1, %cst {dimension_numbers = #tpu.dot_dimension_numbers<[1], [0], [0], [1], [0, 0, 1, 1], [], []>} : vector<8x24xf32>, vector<24x88xf32>, vector<8x88xf32> -> vector<8x88xf32>
    %c0_3 = arith.constant 0 : index
    %c0_4 = arith.constant 0 : index
    %3 = vector.load %arg5[%c0_3, %c0_4] : memref<1x88xf32, #tpu.memory_space<vmem>>, vector<1x88xf32>
    %4 = vector.broadcast %3 : vector<1x88xf32> to vector<8x88xf32>
    %5 = arith.cmpf oeq, %2, %4 : vector<8x88xf32>
    %6 = arith.extui %5 : vector<8x88xi1> to vector<8x88xi32>
    %7 = arith.sitofp %6 : vector<8x88xi32> to vector<8x88xf32>
    %c0_5 = arith.constant 0 : index
    %c0_6 = arith.constant 0 : index
    %8 = vector.load %arg6[%c0_5, %c0_6] : memref<1x88xf32, #tpu.memory_space<vmem>>, vector<1x88xf32>
    %cst_7 = arith.constant 5.000000e-01 : f32
    %9 = vector.broadcast %cst_7 : f32 to vector<1x88xf32>
    %10 = arith.cmpf ogt, %8, %9 : vector<1x88xf32>
    %11 = vector.shape_cast %10 : vector<1x88xi1> to vector<1x88xi1>
    %12 = vector.broadcast %11 : vector<1x88xi1> to vector<8x88xi1>
    %13 = arith.select %12, %7, %2 : vector<8x88xi1>, vector<8x88xf32>
    %c0_8 = arith.constant 0 : index
    %c0_9 = arith.constant 0 : index
    %14 = vector.load %arg3[%c0_8, %c0_9] : memref<88x128xf32, #tpu.memory_space<vmem>>, vector<88x128xf32>
    %cst_10 = arith.constant dense<0.000000e+00> : vector<8x128xf32>
    %15 = tpu.matmul %13, %14, %cst_10 {dimension_numbers = #tpu.dot_dimension_numbers<[1], [0], [0], [1], [0, 0, 1, 1], [], []>} : vector<8x88xf32>, vector<88x128xf32>, vector<8x128xf32> -> vector<8x128xf32>
    %16 = arith.mulf %15, %15 : vector<8x128xf32>
    %c0_11 = arith.constant 0 : index
    %c0_12 = arith.constant 0 : index
    %17 = vector.load %arg4[%c0_11, %c0_12] : memref<128x128xf32, #tpu.memory_space<vmem>>, vector<128x128xf32>
    %cst_13 = arith.constant dense<0.000000e+00> : vector<8x128xf32>
    %18 = tpu.matmul %16, %17, %cst_13 {dimension_numbers = #tpu.dot_dimension_numbers<[1], [0], [0], [1], [0, 0, 1, 1], [], []>} : vector<8x128xf32>, vector<128x128xf32>, vector<8x128xf32> -> vector<8x128xf32>
    %cst_14 = arith.constant 9.99999974E-6 : f32
    %19 = vector.broadcast %cst_14 : f32 to vector<8x128xf32>
    %20 = arith.addf %18, %19 : vector<8x128xf32>
    %21 = math.rsqrt %20 : vector<8x128xf32>
    %22 = arith.mulf %15, %21 : vector<8x128xf32>
    %c0_15 = arith.constant 0 : index
    %c0_16 = arith.constant 0 : index
    %23 = vector.load %arg7[%c0_15, %c0_16] : memref<1x128xf32, #tpu.memory_space<vmem>>, vector<1x128xf32>
    %24 = vector.broadcast %23 : vector<1x128xf32> to vector<8x128xf32>
    %25 = arith.mulf %22, %24 : vector<8x128xf32>
    %c0_17 = arith.constant 0 : index
    %c0_18 = arith.constant 0 : index
    %26 = vector.load %arg8[%c0_17, %c0_18] : memref<1x128xf32, #tpu.memory_space<vmem>>, vector<1x128xf32>
    %27 = vector.broadcast %26 : vector<1x128xf32> to vector<8x128xf32>
    %28 = arith.addf %25, %27 : vector<8x128xf32>
    %c0_19 = arith.constant 0 : index
    %c0_20 = arith.constant 0 : index
    %29 = vector.load %arg9[%c0_19, %c0_20] : memref<8x128xf32, #tpu.memory_space<vmem>>, vector<8x128xf32>
    tpu.vector_store %arg9[%c0_19, %c0_20], %28 {strides = array<i32>} : memref<8x128xf32, #tpu.memory_space<vmem>>, vector<8x128xf32>,
    return
  }
  func.func @transform_0(%arg0: i32) -> (i32, i32) {
    %c0_i32 = arith.constant 0 : i32
    %c0_i32_0 = arith.constant 0 : i32
    return %arg0, %c0_i32 : i32, i32
  }
  func.func @transform_1(%arg0: i32) -> (i32, i32) {
    %c0_i32 = arith.constant 0 : i32
    %c0_i32_0 = arith.constant 0 : i32
    %c0_i32_1 = arith.constant 0 : i32
    return %c0_i32, %c0_i32_0 : i32, i32
  }
  func.func @transform_2(%arg0: i32) -> (i32, i32) {
    %c0_i32 = arith.constant 0 : i32
    %c0_i32_0 = arith.constant 0 : i32
    %c0_i32_1 = arith.constant 0 : i32
    return %c0_i32, %c0_i32_0 : i32, i32
  }
  func.func @transform_3(%arg0: i32) -> (i32, i32) {
    %c0_i32 = arith.constant 0 : i32
    %c0_i32_0 = arith.constant 0 : i32
    %c0_i32_1 = arith.constant 0 : i32
    return %c0_i32, %c0_i32_0 : i32, i32
  }
  func.func @transform_4(%arg0: i32) -> (i32, i32) {
    %c0_i32 = arith.constant 0 : i32
    %c0_i32_0 = arith.constant 0 : i32
    %c0_i32_1 = arith.constant 0 : i32
    return %c0_i32, %c0_i32_0 : i32, i32
  }
  func.func @transform_5(%arg0: i32) -> (i32, i32) {
    %c0_i32 = arith.constant 0 : i32
    %c0_i32_0 = arith.constant 0 : i32
    %c0_i32_1 = arith.constant 0 : i32
    return %c0_i32, %c0_i32_0 : i32, i32
  }
  func.func @transform_6(%arg0: i32) -> (i32, i32) {
    %c0_i32 = arith.constant 0 : i32
    %c0_i32_0 = arith.constant 0 : i32
    %c0_i32_1 = arith.constant 0 : i32
    return %c0_i32, %c0_i32_0 : i32, i32
  }
  func.func @transform_7(%arg0: i32) -> (i32, i32) {
    %c0_i32 = arith.constant 0 : i32
    %c0_i32_0 = arith.constant 0 : i32
    %c0_i32_1 = arith.constant 0 : i32
    return %c0_i32, %c0_i32_0 : i32, i32
  }
  func.func @transform_8(%arg0: i32) -> (i32, i32) {
    %c0_i32 = arith.constant 0 : i32
    %c0_i32_0 = arith.constant 0 : i32
    return %arg0, %c0_i32 : i32, i32
  }
}

</mosaic_0001>

<bundles_post_ra>
// kernel: tpu_custom_call.1
= control target key start
LH: loop header
LB: loop body
LE: loop exit
PB: predicated region body
PF: predicated region fallthrough
CT: control target
= control target key end

     0   :  { %13 = vsyncpa [#allocation3], 0  ;;  %s829_s0 = inlined_call_operand.hbm [shape: f32[8,24], index: 0, kind: input, shape index: {}]   ;;  %s830_s1 = inlined_call_operand.hbm [shape: f32[24,88], index: 1, kind: input, shape index: {}]   ;;  %s831_s2 = inlined_call_operand.hbm [shape: f32[88,128], index: 2, kind: input, shape index: {}]   ;;  %s832_s3 = inlined_call_operand.hbm [shape: f32[128,128], index: 3, kind: input, shape index: {}]   ;;  %s833_s4 = inlined_call_operand.vmem [shape: f32[1,88], index: 4, kind: input, shape index: {}]   ;;  %s834_s5 = inlined_call_operand.vmem [shape: f32[1,88], index: 5, kind: input, shape index: {}]   ;;  %s835_s6 = inlined_call_operand.vmem [shape: f32[1,128], index: 6, kind: input, shape index: {}]   ;;  %s836_s7 = inlined_call_operand.vmem [shape: f32[1,128], index: 7, kind: input, shape index: {}]   ;;  %s837_s8 = inlined_call_operand.hbm [shape: f32[8,128], index: 8, kind: output, shape index: {}]  }
   0x1   :  { %14 = vsyncpa [#allocation6], 0 }
   0x2   :  { %15 = vsyncpa [#allocation9], 0 }
   0x3   :  { %16 = vsyncpa [#allocation4], 0  ;;  %s669_s27 = smov [#allocation5]   ;;  %s551_s9 = scalar_lea.hbm %s830_s1, 384 }
   0x4   :  { %s32_s28 = sshll.u32 %s669_s27, 4  ;;  %p552_p0 = scmp.ne.s32.totalorder %s830_s1, %s551_s9  ;;  %s33_s28 = int_to_ptr.vmem [resolvable:$true] %s32_s28 }
   0x5   :  { %p555_p1 = scmp.lt.u32.totalorder %s551_s9, %s830_s1 }
   0x7   :  { %p557_p2 = pnand %p555_p1, %p552_p0 }
   0x9   :  { %560 = shalt.err (!%p557_p2)
}
   0xa   :  { %s561_s14 = scalar_lea.vmem %s33_s28, 384  ;;  %p566_p4 = scmp.lt.s32.totalorder %s33_s28, %s33_s28 }
   0xb   :  { %p562_p3 = scmp.ne.s32.totalorder %s33_s28, %s561_s14  ;;  %p567_p5 = scmp.lt.s32.totalorder %s561_s14, %s561_s14 }
   0xd   :  { %p568_p6 = por %p567_p5, %p566_p4 }
   0xf   :  { %p569_p7 = pnand %p568_p6, %p562_p3 }
  0x11   :  { %572 = shalt.err (!%p569_p7)
}
  0x12   :  { %s670_s15 = smov 128   ;;  %s671_s16 = smov 8  }
  0x13   :  { %38 = dma.hbm_to_vmem [thread:$0]  %s830_s1, 384, %s33_s28, [#allocation6], %s670_s15, %s670_s15, %s671_s16  }
  0x14   :  { %s672_s19 = smov [#allocation2]   ;;  %s673_s21 = smov [#allocation7]  }
  0x15   :  { %s23_s20 = sshll.u32 %s672_s19, 4  ;;  %s44_s22 = sshll.u32 %s673_s21, 4  ;;  %s24_s20 = int_to_ptr.vmem [resolvable:$true] %s23_s20  ;;  %s45_s22 = int_to_ptr.vmem [resolvable:$true] %s44_s22 }
  0x16   :  { %s573_s25 = scalar_lea.hbm %s829_s0, 128 }
  0x17   :  { %p574_p8 = scmp.ne.s32.totalorder %s829_s0, %s573_s25  ;;  %p577_p9 = scmp.lt.u32.totalorder %s573_s25, %s829_s0 }
  0x19   :  { %p579_p10 = pnand %p577_p9, %p574_p8 }
  0x1b   :  { %582 = shalt.err (!%p579_p10)
}
  0x1c   :  { %s583_s1 = scalar_lea.vmem %s24_s20, 128  ;;  %p588_p12 = scmp.lt.s32.totalorder %s24_s20, %s24_s20 }
  0x1d   :  { %p584_p11 = scmp.ne.s32.totalorder %s24_s20, %s583_s1  ;;  %p589_p13 = scmp.lt.s32.totalorder %s583_s1, %s583_s1 }
  0x1f   :  { %p590_p0 = por %p589_p13, %p588_p12 }
  0x21   :  { %p591_p1 = pnand %p590_p0, %p584_p11 }
  0x23   :  { %594 = shalt.err (!%p591_p1)
}
  0x24   :  { %26 = dma.hbm_to_vmem [thread:$0]  %s829_s0, 128, %s24_s20, [#allocation3]  }
  0x25   :  { %s595_s12 = scalar_lea.hbm %s831_s2, 1408 }
  0x26   :  { %p596_p2 = scmp.ne.s32.totalorder %s831_s2, %s595_s12  ;;  %p599_p3 = scmp.lt.u32.totalorder %s595_s12, %s831_s2 }
  0x28   :  { %p601_p4 = pnand %p599_p3, %p596_p2 }
  0x2a   :  { %604 = shalt.err (!%p601_p4)
}
  0x2b   :  { %s605_s19 = scalar_lea.vmem %s45_s22, 1408  ;;  %p610_p6 = scmp.lt.s32.totalorder %s45_s22, %s45_s22 }
  0x2c   :  { %p606_p5 = scmp.ne.s32.totalorder %s45_s22, %s605_s19  ;;  %p611_p7 = scmp.lt.s32.totalorder %s605_s19, %s605_s19 }
  0x2e   :  { %p612_p8 = por %p611_p7, %p610_p6 }
  0x30   :  { %p613_p9 = pnand %p612_p8, %p606_p5 }
  0x32   :  { %616 = shalt.err (!%p613_p9)
}
  0x33   :  { %50 = dma.hbm_to_vmem [thread:$0]  %s831_s2, 1408, %s45_s22, [#allocation6], %s670_s15, %s670_s15, %s671_s16  }
  0x34   :  { %s674_s21 = smov [#allocation8]   ;;  %s617_s26 = scalar_lea.hbm %s832_s3, 2048 }
  0x35   :  { %s56_s23 = sshll.u32 %s674_s21, 4  ;;  %p618_p10 = scmp.ne.s32.totalorder %s832_s3, %s617_s26  ;;  %s57_s23 = int_to_ptr.vmem [resolvable:$true] %s56_s23 }
  0x36   :  { %p621_p11 = scmp.lt.u32.totalorder %s617_s26, %s832_s3 }
  0x38   :  { %p623_p12 = pnand %p621_p11, %p618_p10 }
  0x3a   :  { %626 = shalt.err (!%p623_p12)
}
  0x3b   :  { %s627_s28 = scalar_lea.vmem %s57_s23, 2048  ;;  %p632_p0 = scmp.lt.s32.totalorder %s57_s23, %s57_s23 }
  0x3c   :  { %p628_p13 = scmp.ne.s32.totalorder %s57_s23, %s627_s28  ;;  %p633_p1 = scmp.lt.s32.totalorder %s627_s28, %s627_s28 }
  0x3e   :  { %p634_p2 = por %p633_p1, %p632_p0 }
  0x40   :  { %p635_p3 = pnand %p634_p2, %p628_p13 }
  0x42   :  { %638 = shalt.err (!%p635_p3)
}
  0x43   :  { %62 = dma.hbm_to_vmem [thread:$0]  %s832_s3, 2048, %s57_s23, [#allocation9], %s670_s15, %s670_s15, %s671_s16  }
  0x44   :  { %661 = dma.done.wait [#allocation3], 128  }
  0x45   :  { %662 = vsyncadd [#allocation3], 4294967168 }
  0x46   :  { %663 = dma.done.wait [#allocation6], 1792  }
  0x47   :  { %664 = vsyncadd [#allocation6], 4294965504 }
  0x48   :  { %665 = dma.done.wait [#allocation9], 2048  }
  0x49   :  { %666 = vsyncadd [#allocation9], 4294965248  ;;  %v675_v0 = vmov 0.0|0.0   ;;  %vm676_vm0 = vmmov 0   ;;  %v677_v1 = vmov 0.0   ;;  %v84_v2 = vld [vmem:[#allocation5] sm:$0xff]  ;;  %v174_v44 = vlaneseq }
  0x4a   :  { %496 = vmatprep.subr.bf16.mxu1 %v675_v0  ;;  %433 = vmatprep.mubr.msk.f32.mxu1 %vm676_vm0, %v677_v1  ;;  %v85_v3 = vld [vmem:[#allocation5 + $0x8] sm:$0xff]  ;;  %v180_v5 = vld [vmem:[#allocation7] sm:$0xff]  ;;  %v181_v6 = vld [vmem:[#allocation7 + $0x8] sm:$0xff]  ;;  %vm87_vm1 = vcmask 195584   ;;  %v678_v48 = vmov 0   ;;  %vm191_vm5 = vcmask 719872  }
  0x4b   :  { %514 = vmatprep.subr.bf16.mxu0 %v675_v0  ;;  %493 = vmatprep.mubr.msk.f32.mxu0 %vm676_vm0, %v677_v1  ;;  %v497_v4 = vpack.c.bf16 %v85_v3, %v84_v2  ;;  %v86_v7 = vld [vmem:[#allocation5 + $0x10] sm:$0xff]  ;;  %v83_v8 = vld [vmem:[#allocation2] sm:$0xff]  ;;  %v500_v9 = vpack.c.bf16 %v181_v6, %v180_v5  ;;  %v182_v10 = vld [vmem:[#allocation7 + $0x10] sm:$0xff]  ;;  %v175_v46 = vshrl.u32 %v174_v44, 7  ;;  %s679_s12 = smov [#allocation10]  }
  0x4c   :  { %v183_v11 = vld [vmem:[#allocation7 + $0x18] sm:$0xff]  ;;  %v184_v13 = vld [vmem:[#allocation7 + $0x20] sm:$0xff]  ;;  %v185_v14 = vld [vmem:[#allocation7 + $0x28] sm:$0xff]  ;;  %s377_s13 = sshll.u32 %s679_s12, 4  ;;  %s378_s13 = int_to_ptr.vmem [resolvable:$true] %s377_s13 }
  0x4d   :  { %498 = vmatpush3.bf16.msra.mxu1 %v497_v4  ;;  %v503_v12 = vpack.c.bf16 %v183_v11, %v182_v10  ;;  %v506_v15 = vpack.c.bf16 %v185_v14, %v184_v13  ;;  %v186_v16 = vld [vmem:[#allocation7 + $0x30] sm:$0xff]  ;;  %v187_v17 = vld [vmem:[#allocation7 + $0x38] sm:$0xff]  ;;  %v188_v19 = vld [vmem:[#allocation7 + $0x40] sm:$0xff]  ;;  %v176_v47 = vsub.s32 0, %v175_v46  ;;  %s639_s14 = scalar_lea.vmem %s378_s13, 128  ;;  %p644_p5 = scmp.lt.s32.totalorder %s378_s13, %s378_s13 }
  0x4e   :  { %431 = vmatprep.subr.mxu1 %v677_v1  ;;  %v509_v18 = vpack.c.bf16 %v187_v17, %v186_v16  ;;  %v189_v20 = vld [vmem:[#allocation7 + $0x48] sm:$0xff]  ;;  %v190_v22 = vld [vmem:[#allocation7 + $0x50] sm:$0xff]  ;;  %v266_v23 = vld [vmem:[#allocation8] sm:$0xff]  ;;  %p640_p4 = scmp.ne.s32.totalorder %s378_s13, %s639_s14  ;;  %p645_p6 = scmp.lt.s32.totalorder %s639_s14, %s639_s14 }
  0x4f   :  { %v512_v21 = vpack.c.bf16 %v189_v20, %v188_v19  ;;  %v267_v24 = vld [vmem:[#allocation8 + $0x8] sm:$0xff]  ;;  %v268_v25 = vld [vmem:[#allocation8 + $0x10] sm:$0xff]  ;;  %v269_v27 = vld [vmem:[#allocation8 + $0x18] sm:$0xff] }
  0x50   :  { %v515_v26 = vpack.c.bf16 %v267_v24, %v266_v23  ;;  %v518_v28 = vpack.c.bf16 %v269_v27, %v268_v25  ;;  %v270_v29 = vld [vmem:[#allocation8 + $0x20] sm:$0xff]  ;;  %v271_v30 = vld [vmem:[#allocation8 + $0x28] sm:$0xff]  ;;  %v272_v32 = vld [vmem:[#allocation8 + $0x30] sm:$0xff]  ;;  %p646_p7 = por %p645_p6, %p644_p5 }
  0x51   :  { %432 = vmatpush3.msra.mxu1 %v86_v7  ;;  %v521_v31 = vpack.c.bf16 %v271_v30, %v270_v29  ;;  %v273_v33 = vld [vmem:[#allocation8 + $0x38] sm:$0xff]  ;;  %v274_v35 = vld [vmem:[#allocation8 + $0x40] sm:$0xff]  ;;  %v275_v36 = vld [vmem:[#allocation8 + $0x48] sm:$0xff] }
  0x52   :  { %434 = vmatmul.mubr.msk.f32.vlgmr.msra.gmra.mrb[0].mxu1 %vm87_vm1, %v83_v8  ;;  %499 = vmatprep.subr.bf16.mxu1 %v675_v0  ;;  %v524_v34 = vpack.c.bf16 %v273_v33, %v272_v32  ;;  %v527_v37 = vpack.c.bf16 %v275_v36, %v274_v35  ;;  %v276_v38 = vld [vmem:[#allocation8 + $0x50] sm:$0xff]  ;;  %v277_v39 = vld [vmem:[#allocation8 + $0x58] sm:$0xff]  ;;  %v278_v41 = vld [vmem:[#allocation8 + $0x60] sm:$0xff]  ;;  %p647_p8 = pnand %p646_p7, %p640_p4 }
  0x53   :  { %501 = vmatpush3.bf16.msra.mxu1 %v500_v9  ;;  %458 = vmatprep.mubr.msk.f32.mxu1 %vm676_vm0, %v677_v1  ;;  %v530_v40 = vpack.c.bf16 %v277_v39, %v276_v38  ;;  %v279_v42 = vld [vmem:[#allocation8 + $0x68] sm:$0xff]  ;;  %v280_v56 = vld [vmem:[#allocation8 + $0x70] sm:$0xff]  ;;  %v281_v57 = vld [vmem:[#allocation8 + $0x78] sm:$0xff] }
  0x54   :  { %502 = vmatprep.subr.bf16.mxu1 %v675_v0  ;;  %516 = vmatpush3.bf16.msra.mxu0 %v515_v26  ;;  %v533_v43 = vpack.c.bf16 %v279_v42, %v278_v41  ;;  %v171_v45 = vld [vmem:[%s834_s5] sm:$0x1]  ;;  %v536_v58 = vpack.c.bf16 %v281_v57, %v280_v56 }
  0x55   :  { %517 = vmatprep.subr.bf16.mxu0 %v675_v0  ;;  %vm172_vm2 = vcmp.gt.f32.partialorder %v171_v45, 0.5  ;;  %v389_v51 = vld [vmem:[%s833_s4] ss:$0 sm:$0xff] }
  0x56   :  { %v173_v49 = vsel %vm172_vm2, 1, %v678_v48  ;;  %v392_v3 = vld [vmem:[%s835_s6] ss:$0 sm:$0xff] }
  0x57   :  { %504 = vmatpush3.bf16.msra.mxu1 %v503_v12  ;;  %v177_v50 = vrot.slane %v173_v49, %v176_v47  ;;  %v393_v4 = vld [vmem:[%s836_s7] ss:$0 sm:$0xff] }
  0x58   :  { %505 = vmatprep.subr.bf16.mxu1 %v675_v0  ;;  %519 = vmatpush3.bf16.msra.mxu0 %v518_v28 }
  0x59   :  { %520 = vmatprep.subr.bf16.mxu0 %v675_v0  ;;  %vm178_vm3 = vcmp.eq.s32.totalorder %v177_v50, 1 }
  0x5b   :  { %507 = vmatpush3.bf16.msra.mxu1 %v506_v15 }
  0x5c   :  { %508 = vmatprep.subr.bf16.mxu1 %v675_v0  ;;  %522 = vmatpush3.bf16.msra.mxu0 %v521_v31 }
  0x5d   :  { %523 = vmatprep.subr.bf16.mxu0 %v675_v0 }
  0x5f   :  { %510 = vmatpush3.bf16.msra.mxu1 %v509_v18 }
  0x60   :  { %511 = vmatprep.subr.bf16.mxu1 %v675_v0  ;;  %525 = vmatpush3.bf16.msra.mxu0 %v524_v34 }
  0x61   :  { %526 = vmatprep.subr.bf16.mxu0 %v675_v0 }
  0x63   :  { %513 = vmatpush3.bf16.msra.mxu1 %v512_v21 }
  0x64   :  { %456 = vmatprep.subr.mxu1 %v677_v1  ;;  %528 = vmatpush3.bf16.msra.mxu0 %v527_v37 }
  0x65   :  { %529 = vmatprep.subr.bf16.mxu0 %v675_v0 }
  0x67   :  { %457 = vmatpush3.msra.mxu1 %v190_v22 }
  0x68   :  { %531 = vmatpush3.bf16.msra.mxu0 %v530_v40 }
  0x69   :  { %532 = vmatprep.subr.bf16.mxu0 %v675_v0 }
  0x6c   :  { %534 = vmatpush3.bf16.msra.mxu0 %v533_v43 }
  0x6d   :  { %535 = vmatprep.subr.bf16.mxu0 %v675_v0 }
  0x70   :  { %537 = vmatpush3.bf16.msra.mxu0 %v536_v58 }
 0x125   :  { %v157_v52 = vpop.f32.mrb[0].mxu1 }
 0x126   :  { %vm168_vm4 = vcmp.eq.f32.partialorder %v157_v52, %v389_v51  ;;  %v435_v53 = vpop.f32.mrb[1].mxu1 }
 0x127   :  { %v390_v54 = vsel %vm168_vm4, 1.0, %v677_v1 }
 0x128   :  { %v179_v55 = vsel %vm178_vm3, %v390_v54, %v157_v52 }
 0x129   :  { %459 = vmatmul.mubr.msk.f32.vlgmr.msra.gmra.mrb[2].mxu1 %vm191_vm5, %v179_v55 }
 0x1fc   :  { %v261_v59 = vpop.f32.mrb[2].mxu1 }
 0x1fd   :  { %v265_v60 = vmul.f32 %v261_v59, %v261_v59  ;;  %v460_v61 = vpop.f32.mrb[3].mxu1 }
 0x1ff   :  { %494 = vmatmul.mubr.f32.vlgmr.msra.gmra.mrb[0].mxu0 %v265_v60 }
 0x2d2   :  { %v348_v62 = vpop.f32.mrb[0].mxu0 }
 0x2d3   :  { %v349_v63 = vadd.f32 1e-05, %v348_v62  ;;  %v495_v0 = vpop.f32.mrb[1].mxu0 }
 0x2d5   :  { %549 = vrsqrt.f32 %v349_v63 }
 0x2df   :  { %v550_v2 = vpop.eup %549 }
 0x2e0   :  { %v353_v1 = vmul.f32 %v550_v2, %v261_v59 }
 0x2e2   :  { %v361_v5 = vmul.f32 %v392_v3, %v353_v1 }
 0x2e4   :  { %v369_v6 = vadd.f32 %v393_v4, %v361_v5 }
 0x2e6   :  { %370 = vst [vmem:[#allocation10] sm:$0xff] %v369_v6 }
 0x2e7   :  { %650 = shalt.err (!%p647_p8)
}
 0x2e8   :  { %s651_s18 = scalar_lea.hbm %s837_s8, 128 }
 0x2e9   :  { %p652_p9 = scmp.ne.s32.totalorder %s837_s8, %s651_s18  ;;  %p655_p10 = scmp.lt.u32.totalorder %s651_s18, %s837_s8 }
 0x2eb   :  { %p657_p11 = pnand %p655_p10, %p652_p9 }
 0x2ed   :  { %660 = shalt.err (!%p657_p11)
}
 0x2ee   :  { %380 = dma.vmem_to_hbm [thread:$0]  %s378_s13, 128, %s837_s8, [#allocation4]  }
 0x2ef   :  { %667 = dma.done.wait [#allocation4], 128  }
 0x2f0   :  { %668 = vsyncadd [#allocation4], 4294967168 }
 0x2f1   :  { %384 = vsyncpa [#allocation3], 1 }
 0x2f2   :  { %385 = vsyncpa [#allocation6], 1 }
 0x2f3   :  { %386 = vsyncpa [#allocation9], 1 }
 0x2f4   :  { %387 = vsyncpa [#allocation4], 1 }

</bundles_post_ra>
